<compile_context>
chip_gen: v7x
topology: tpu7x:2x2x1
jax: 0.10.0
libtpu: 0.0.40
codegen_flags: <defaults>
</compile_context>

<pallas_src>
import jax
import jax.numpy as jnp
from jax.experimental import pallas as pl
from jax.experimental.pallas import tpu as pltpu


LN_EPS = 1e-5   # torch.nn.LayerNorm default
LANE = 128


def _round_up(x, m):
    return ((x + m - 1) // m) * m


def _transition_kernel(x_ref, w1_ref, w2_ref, vec_ref, mu_ref):
    hidden = w1_ref.shape[-1]
    out_w = mu_ref.shape[-1]

    # --- trunk Linear: [tile, 128] @ [128, hidden] on bf16 MXU, f32 acc ---
    h = jnp.dot(x_ref[...], w1_ref[...], preferred_element_type=jnp.float32)
    h = h + vec_ref[0:1, :hidden]                          # b1

    # --- one-pass LayerNorm over hidden (biased variance, like torch) ---
    inv_n = jnp.float32(1.0 / hidden)
    mean = jnp.sum(h, axis=-1, keepdims=True) * inv_n
    ex2 = jnp.sum(h * h, axis=-1, keepdims=True) * inv_n   # independent XLU reduce
    var = jnp.maximum(ex2 - mean * mean, 0.0)
    inv = jax.lax.rsqrt(var + LN_EPS)
    h = (h - mean) * inv * vec_ref[1:2, :hidden] + vec_ref[2:3, :hidden]

    # --- ReLU ---
    h = jnp.maximum(h, 0.0)

    # --- mu head: LHS stays f32 (no activation re-quantization), f32 acc ---
    mu = jnp.dot(h, w2_ref[...].astype(jnp.float32),
                 preferred_element_type=jnp.float32)
    mu = mu + vec_ref[3:4, :out_w]                         # b2 (zero-padded cols)
    mu_ref[...] = mu.astype(mu_ref.dtype)


def prepare_transition_params(params, feature_dim, action_dim,
                              io_dtype=jnp.bfloat16):
    """One-time pad / cast / pack of weights (hoisted out of the hot path)."""
    io_dtype = jnp.dtype(io_dtype)
    hidden = params["b1"].shape[-1]
    in_dim = feature_dim + action_dim
    pad_in = _round_up(in_dim, LANE)
    pad_out = _round_up(feature_dim, LANE)
    vec_w = max(_round_up(hidden, LANE), pad_out)

    w1 = jnp.zeros((pad_in, hidden), io_dtype)
    w1 = w1.at[:in_dim, :].set(params["w1"].astype(io_dtype))
    w2 = jnp.zeros((hidden, pad_out), io_dtype)
    w2 = w2.at[:, :feature_dim].set(params["w2"].astype(io_dtype))

    vecs = jnp.zeros((4, vec_w), jnp.float32)
    vecs = vecs.at[0, :hidden].set(params["b1"].astype(jnp.float32))
    vecs = vecs.at[1, :hidden].set(params["ln_gamma"].astype(jnp.float32))
    vecs = vecs.at[2, :hidden].set(params["ln_beta"].astype(jnp.float32))
    vecs = vecs.at[3, :feature_dim].set(params["b2"].astype(jnp.float32))
    return {"w1": w1, "w2": w2, "vecs": vecs}


def _pick_batch_tile(batch, sublane, *, single_step_rows=1024,
                     tile_cap=4096, min_steps=4):
    """Generation-aware tile choice.

    * batch <= single_step_rows: whole batch in one grid step (single-TC
      v5e/v6e gain nothing from extra ~0.35us steps; on v7x a cross-core
      split is pure overhead for sub-us of work).
    * larger batches: biggest sublane-aligned tile (<= tile_cap) dividing the
      batch that still yields >= min_steps grid steps, so v7x's two cores each
      get >= 2 pipelined steps while per-step overhead stays amortized.
    Falls back to one step when the batch has no suitable divisor.
    """
    if batch <= single_step_rows:
        return batch
    cap = min(tile_cap, batch // min_steps)
    best = None
    for t in range(sublane, cap + 1, sublane):
        if batch % t == 0:
            best = t
    return best if best is not None else batch


def transition_model_forward(obs, action, prepared, *, batch_tile=None):
    """Deterministic TransitionModel forward. Returns (mu, None, None)."""
    B, feature_dim = obs.shape
    _, action_dim = action.shape
    in_dim = feature_dim + action_dim

    w1, w2, vecs = prepared["w1"], prepared["w2"], prepared["vecs"]
    pad_in, hidden = w1.shape
    pad_out = w2.shape[-1]
    vec_rows, vec_w = vecs.shape
    io_dtype = jnp.dtype(w1.dtype)
    assert pad_in >= in_dim and pad_out >= feature_dim and vec_w >= pad_out

    # Sublane granularity of the (sublane, 128) register tile for this dtype.
    sublane = 8 * max(1, 4 // io_dtype.itemsize)
    if batch_tile is None:
        batch_tile = _pick_batch_tile(B, sublane)
    assert B % batch_tile == 0, "batch must be divisible by batch_tile"
    assert batch_tile == B or batch_tile % sublane == 0, (
        f"batch_tile must be a multiple of {sublane} for dtype {io_dtype} "
        "(or equal to the full batch)")
    grid = (B // batch_tile,)

    # Lane-dense input: [obs | action | zeros] -> [B, pad_in]; fuses under jit.
    x = jnp.concatenate(
        [obs.astype(io_dtype), action.astype(io_dtype),
         jnp.zeros((B, pad_in - in_dim), io_dtype)], axis=-1)

    row_spec = lambda shape: pl.BlockSpec(shape, lambda i: (i, 0))
    full_spec = lambda shape: pl.BlockSpec(shape, lambda i: (0, 0))

    # Explicit VMEM budget: double-buffered streaming blocks + resident weights
    # + f32 intermediate headroom; floor 4 MiB, cap well under v7x's 64 MiB.
    itemsize = io_dtype.itemsize
    stream_bytes = 2 * batch_tile * (pad_in + pad_out) * itemsize
    weight_bytes = 2 * ((pad_in * hidden + hidden * pad_out) * itemsize
                        + vec_rows * vec_w * 4)
    scratch_bytes = 4 * batch_tile * max(hidden, pad_out) * 4
    vmem_limit = int(min(max(2 * (stream_bytes + weight_bytes + scratch_bytes),
                             4 << 20), 48 << 20))

    mu_padded = pl.pallas_call(
        _transition_kernel,
        out_shape=jax.ShapeDtypeStruct((B, pad_out), io_dtype),
        grid_spec=pltpu.PrefetchScalarGridSpec(
            num_scalar_prefetch=0,
            grid=grid,
            in_specs=[
                row_spec((batch_tile, pad_in)),     # x  = [obs | action | 0]
                full_spec((pad_in, hidden)),        # W1 (zero-padded K rows)
                full_spec((hidden, pad_out)),       # W2 (zero-padded N cols)
                full_spec((vec_rows, vec_w)),       # packed [b1; gamma; beta; b2]
            ],
            out_specs=row_spec((batch_tile, pad_out)),
        ),
        compiler_params=pltpu.CompilerParams(
            dimension_semantics=("parallel",),
            vmem_limit_bytes=vmem_limit),
    )(x, w1, w2, vecs)

    mu = mu_padded[:, :feature_dim]   # drop the lane padding (fuses under jit)
    # TODO(synk): 'probabilistic' model_type (sigmoid-scaled sigma + randn
    # reparameterization) not implemented; only the 'deterministic' path here.
    return mu, None, None


def init_params(key, feature_dim, action_dim, hidden_dim, dtype=jnp.float32):
    """Deterministic synthetic init (uniform, fan-in scaled like torch)."""
    k1, k2, k3, k4 = jax.random.split(key, 4)
    in_dim = feature_dim + action_dim
    lim1 = in_dim ** -0.5
    lim2 = hidden_dim ** -0.5
    return {
        "w1": jax.random.uniform(k1, (in_dim, hidden_dim), dtype, -lim1, lim1),
        "b1": jax.random.uniform(k2, (hidden_dim,), dtype, -lim1, lim1),
        "ln_gamma": jnp.ones((hidden_dim,), dtype),
        "ln_beta": jnp.zeros((hidden_dim,), dtype),
        "w2": jax.random.uniform(k3, (hidden_dim, feature_dim), dtype, -lim2, lim2),
        "b2": jax.random.uniform(k4, (feature_dim,), dtype, -lim2, lim2),
    }


def _reference_forward(obs, action, params, io_dtype=jnp.bfloat16):
    """Pure-JAX reference mirroring the kernel's bf16-IO / f32-math scheme."""
    x = jnp.concatenate([obs, action], -1).astype(io_dtype).astype(jnp.float32)
    w1 = params["w1"].astype(io_dtype).astype(jnp.float32)
    w2 = params["w2"].astype(io_dtype).astype(jnp.float32)
    h = x @ w1 + params["b1"].astype(jnp.float32)
    mean = jnp.mean(h, -1, keepdims=True)
    var = jnp.mean((h - mean) ** 2, -1, keepdims=True)
    h = (h - mean) / jnp.sqrt(var + LN_EPS)
    h = h * params["ln_gamma"].astype(jnp.float32) + params["ln_beta"].astype(jnp.float32)
    h = jnp.maximum(h, 0.0)
    return h @ w2 + params["b2"].astype(jnp.float32)


def _reference_forward_f32(obs, action, params):
    """Pure-f32 path equivalent to the original torch module."""
    x = jnp.concatenate([obs, action], -1).astype(jnp.float32)
    h = x @ params["w1"] + params["b1"]
    mean = jnp.mean(h, -1, keepdims=True)
    var = jnp.mean((h - mean) ** 2, -1, keepdims=True)
    h = (h - mean) / jnp.sqrt(var + LN_EPS)
    h = h * params["ln_gamma"] + params["ln_beta"]
    h = jnp.maximum(h, 0.0)
    return h @ params["w2"] + params["b2"]


if __name__ == "__main__":
    feature_dim = 32
    action_dim = 4
    hidden_dim = 64
    batch = 16   # small batch -> single grid step path

    key = jax.random.PRNGKey(0)
    k_obs, k_act, k_p = jax.random.split(key, 3)
    obs = jax.random.normal(k_obs, (batch, feature_dim), jnp.float32)
    action = jax.random.normal(k_act, (batch, action_dim), jnp.float32)
    params = init_params(k_p, feature_dim, action_dim, hidden_dim)

    # One-time weight prep (hoisted out of the hot path); jit'ed forward so
    # the x concat/pad/cast and output slice fuse around the Pallas call.
    prepared = prepare_transition_params(params, feature_dim, action_dim)
    fwd = jax.jit(transition_model_forward)
    mu, sigma, sample = fwd(obs, action, prepared)
    mu = jax.block_until_ready(mu)

    assert mu.shape == (batch, feature_dim)
    assert mu.dtype == jnp.bfloat16
    assert sigma is None and sample is None

    # Tight check vs a reference mirroring the kernel's quantization scheme.
    ref = _reference_forward(obs, action, params)
    ref_q = ref.astype(jnp.bfloat16).astype(jnp.float32)
    assert jnp.allclose(mu.astype(jnp.float32), ref_q, atol=2e-2, rtol=2e-2), \
        "mismatch vs mirrored (bf16-IO) reference"

    # Looser sanity check vs the pure-f32 torch-equivalent path.
    ref32 = _reference_forward_f32(obs, action, params)
    assert jnp.allclose(mu.astype(jnp.float32), ref32, atol=1e-1, rtol=1e-1), \
        "mismatch vs f32 reference"

    print("KERNEL_OK")
</pallas_src>

<mosaic_0001>
module attributes {stable_mosaic.version = 11 : i64} {
  func.func @_transition_kernel(%arg0: i32, %arg1: memref<16x128xbf16, #tpu.memory_space<vmem>>, %arg2: memref<128x64xbf16, #tpu.memory_space<vmem>>, %arg3: memref<64x128xbf16, #tpu.memory_space<vmem>>, %arg4: memref<4x128xf32, #tpu.memory_space<vmem>>, %arg5: memref<16x128xbf16, #tpu.memory_space<vmem>>) attributes {dimension_semantics = [#tpu.dimension_semantics<parallel>], iteration_bounds = array<i64: 1>, scalar_prefetch = 0 : i64, scratch_operands = 0 : i64, tpu.core_type = #tpu.core_type<tc>, window_params = [{transform_indices = @transform_0, window_bounds = array<i64: 16, 128>}, {pipeline_mode = #tpu.pipeline_mode<synchronous>, transform_indices = @transform_1, window_bounds = array<i64: 128, 64>}, {pipeline_mode = #tpu.pipeline_mode<synchronous>, transform_indices = @transform_2, window_bounds = array<i64: 64, 128>}, {pipeline_mode = #tpu.pipeline_mode<synchronous>, transform_indices = @transform_3, window_bounds = array<i64: 4, 128>}, {transform_indices = @transform_4, window_bounds = array<i64: 16, 128>}]} {
    %c0 = arith.constant 0 : index
    %c0_0 = arith.constant 0 : index
    %0 = vector.load %arg1[%c0, %c0_0] : memref<16x128xbf16, #tpu.memory_space<vmem>>, vector<16x128xbf16>
    %c0_1 = arith.constant 0 : index
    %c0_2 = arith.constant 0 : index
    %1 = vector.load %arg2[%c0_1, %c0_2] : memref<128x64xbf16, #tpu.memory_space<vmem>>, vector<128x64xbf16>
    %cst = arith.constant dense<0.000000e+00> : vector<16x64xf32>
    %2 = tpu.matmul %0, %1, %cst {dimension_numbers = #tpu.dot_dimension_numbers<[1], [0], [0], [1], [0, 0, 1, 1], [], []>} : vector<16x128xbf16>, vector<128x64xbf16>, vector<16x64xf32> -> vector<16x64xf32>
    %c0_3 = arith.constant 0 : index
    %c0_4 = arith.constant 0 : index
    %3 = vector.load %arg4[%c0_3, %c0_4] : memref<4x128xf32, #tpu.memory_space<vmem>>, vector<1x64xf32>
    %4 = vector.broadcast %3 : vector<1x64xf32> to vector<16x64xf32>
    %5 = arith.addf %2, %4 : vector<16x64xf32>
    %cst_5 = arith.constant dense<0.000000e+00> : vector<16xf32>
    %6 = vector.multi_reduction <add>, %5, %cst_5 [1] : vector<16x64xf32> to vector<16xf32>
    %7 = vector.shape_cast %6 : vector<16xf32> to vector<16x1xf32>
    %cst_6 = arith.constant 1.562500e-02 : f32
    %8 = vector.broadcast %cst_6 : f32 to vector<16x1xf32>
    %9 = arith.mulf %7, %8 : vector<16x1xf32>
    %10 = arith.mulf %5, %5 : vector<16x64xf32>
    %cst_7 = arith.constant dense<0.000000e+00> : vector<16xf32>
    %11 = vector.multi_reduction <add>, %10, %cst_7 [1] : vector<16x64xf32> to vector<16xf32>
    %12 = vector.shape_cast %11 : vector<16xf32> to vector<16x1xf32>
    %cst_8 = arith.constant 1.562500e-02 : f32
    %13 = vector.broadcast %cst_8 : f32 to vector<16x1xf32>
    %14 = arith.mulf %12, %13 : vector<16x1xf32>
    %15 = arith.mulf %9, %9 : vector<16x1xf32>
    %16 = arith.subf %14, %15 : vector<16x1xf32>
    %cst_9 = arith.constant 0.000000e+00 : f32
    %17 = vector.broadcast %cst_9 : f32 to vector<16x1xf32>
    %18 = arith.maximumf %16, %17 : vector<16x1xf32>
    %cst_10 = arith.constant 9.99999974E-6 : f32
    %19 = vector.broadcast %cst_10 : f32 to vector<16x1xf32>
    %20 = arith.addf %18, %19 : vector<16x1xf32>
    %21 = math.rsqrt %20 : vector<16x1xf32>
    %22 = vector.broadcast %9 : vector<16x1xf32> to vector<16x64xf32>
    %23 = arith.subf %5, %22 : vector<16x64xf32>
    %24 = vector.broadcast %21 : vector<16x1xf32> to vector<16x64xf32>
    %25 = arith.mulf %23, %24 : vector<16x64xf32>
    %c1 = arith.constant 1 : index
    %c0_11 = arith.constant 0 : index
    %26 = vector.load %arg4[%c1, %c0_11] : memref<4x128xf32, #tpu.memory_space<vmem>>, vector<1x64xf32>
    %27 = vector.broadcast %26 : vector<1x64xf32> to vector<16x64xf32>
    %28 = arith.mulf %25, %27 : vector<16x64xf32>
    %c2 = arith.constant 2 : index
    %c0_12 = arith.constant 0 : index
    %29 = vector.load %arg4[%c2, %c0_12] : memref<4x128xf32, #tpu.memory_space<vmem>>, vector<1x64xf32>
    %30 = vector.broadcast %29 : vector<1x64xf32> to vector<16x64xf32>
    %31 = arith.addf %28, %30 : vector<16x64xf32>
    %cst_13 = arith.constant 0.000000e+00 : f32
    %32 = vector.broadcast %cst_13 : f32 to vector<16x64xf32>
    %33 = arith.maximumf %31, %32 : vector<16x64xf32>
    %c0_14 = arith.constant 0 : index
    %c0_15 = arith.constant 0 : index
    %34 = vector.load %arg3[%c0_14, %c0_15] : memref<64x128xbf16, #tpu.memory_space<vmem>>, vector<64x128xbf16>
    %35 = arith.extf %34 : vector<64x128xbf16> to vector<64x128xf32>
    %cst_16 = arith.constant dense<0.000000e+00> : vector<16x128xf32>
    %36 = tpu.matmul %33, %35, %cst_16 {dimension_numbers = #tpu.dot_dimension_numbers<[1], [0], [0], [1], [0, 0, 1, 1], [], []>} : vector<16x64xf32>, vector<64x128xf32>, vector<16x128xf32> -> vector<16x128xf32>
    %c3 = arith.constant 3 : index
    %c0_17 = arith.constant 0 : index
    %37 = vector.load %arg4[%c3, %c0_17] : memref<4x128xf32, #tpu.memory_space<vmem>>, vector<1x128xf32>
    %38 = vector.broadcast %37 : vector<1x128xf32> to vector<16x128xf32>
    %39 = arith.addf %36, %38 : vector<16x128xf32>
    %40 = arith.truncf %39 : vector<16x128xf32> to vector<16x128xbf16>
    %c0_18 = arith.constant 0 : index
    %c0_19 = arith.constant 0 : index
    %41 = vector.load %arg5[%c0_18, %c0_19] : memref<16x128xbf16, #tpu.memory_space<vmem>>, vector<16x128xbf16>
    tpu.vector_store %arg5[%c0_18, %c0_19], %40 {strides = array<i32>} : memref<16x128xbf16, #tpu.memory_space<vmem>>, vector<16x128xbf16>,
    return
  }
  func.func @transform_0(%arg0: i32) -> (i32, i32) {
    %c0_i32 = arith.constant 0 : i32
    %c0_i32_0 = arith.constant 0 : i32
    return %arg0, %c0_i32 : i32, i32
  }
  func.func @transform_1(%arg0: i32) -> (i32, i32) {
    %c0_i32 = arith.constant 0 : i32
    %c0_i32_0 = arith.constant 0 : i32
    %c0_i32_1 = arith.constant 0 : i32
    return %c0_i32, %c0_i32_0 : i32, i32
  }
  func.func @transform_2(%arg0: i32) -> (i32, i32) {
    %c0_i32 = arith.constant 0 : i32
    %c0_i32_0 = arith.constant 0 : i32
    %c0_i32_1 = arith.constant 0 : i32
    return %c0_i32, %c0_i32_0 : i32, i32
  }
  func.func @transform_3(%arg0: i32) -> (i32, i32) {
    %c0_i32 = arith.constant 0 : i32
    %c0_i32_0 = arith.constant 0 : i32
    %c0_i32_1 = arith.constant 0 : i32
    return %c0_i32, %c0_i32_0 : i32, i32
  }
  func.func @transform_4(%arg0: i32) -> (i32, i32) {
    %c0_i32 = arith.constant 0 : i32
    %c0_i32_0 = arith.constant 0 : i32
    return %arg0, %c0_i32 : i32, i32
  }
}

</mosaic_0001>

<bundles_post_ra>
// kernel: transition_model_forward.1
= control target key start
LH: loop header
LB: loop body
LE: loop exit
PB: predicated region body
PF: predicated region fallthrough
CT: control target
= control target key end

     0   :  { %v473_v1 = vmov 0.0   ;;  %vm474_vm0 = vmmov 0   ;;  %s572_s0 = inlined_call_operand.vmem [shape: bf16[16,128], index: 0, kind: input, shape index: {}]   ;;  %s573_s1 = inlined_call_operand.vmem [shape: bf16[128,64], index: 1, kind: input, shape index: {}]   ;;  %s574_s2 = inlined_call_operand.vmem [shape: bf16[64,128], index: 2, kind: input, shape index: {}]   ;;  %s575_s3 = inlined_call_operand.vmem [shape: f32[4,128], index: 3, kind: input, shape index: {}]   ;;  %s576_s4 = inlined_call_operand.hbm [shape: bf16[16,128], index: 4, kind: output, shape index: {}]  }
   0x1   :  { %v436_v0 = vld [vmem:[%s573_s1] sm:$0xff]   ;;  %376 = vmatprep.subr.bf16.mxu0 %v473_v1  ;;  %v437_v2 = vld [vmem:[%s573_s1 + $0x8] sm:$0xff]   ;;  %392 = vmatprep.mubr.msk.bf16.mxu0 %vm474_vm0, %v473_v1  ;;  %v438_v3 = vld [vmem:[%s573_s1 + $0x10] sm:$0xff]  }
   0x2   :  { %377 = vmatpush3.bf16.msra.mxu0 %v436_v0 }
   0x3   :  { %378 = vmatprep.subr.bf16.mxu0 %v473_v1 }
   0x6   :  { %379 = vmatpush3.bf16.msra.mxu0 %v437_v2 }
   0x7   :  { %380 = vmatprep.subr.bf16.mxu0 %v473_v1 }
   0x8   :  { %9 = vsyncpa [#allocation3], 0  ;;  %v439_v4 = vld [vmem:[%s573_s1 + $0x18] sm:$0xff]   ;;  %v440_v5 = vld [vmem:[%s573_s1 + $0x20] sm:$0xff]   ;;  %vm137_vm1 = vcmask 523264   ;;  %s475_s20 = smov [#allocation2]  }
   0x9   :  { %v441_v6 = vld [vmem:[%s573_s1 + $0x28] sm:$0xff]   ;;  %v442_v7 = vld [vmem:[%s573_s1 + $0x30] sm:$0xff]   ;;  %v443_v8 = vld [vmem:[%s573_s1 + $0x38] sm:$0xff]   ;;  %s303_s21 = sshll.u32 %s475_s20, 4  ;;  %s304_s21 = int_to_ptr.vmem [resolvable:$true] %s303_s21 }
   0xa   :  { %381 = vmatpush3.bf16.msra.mxu0 %v438_v3  ;;  %v444_v9 = vld [vmem:[%s572_s0] sm:$0xff]   ;;  %v354_v24 = vld [vmem:[%s574_s2 + $0x8] sm:$0xff]   ;;  %v355_v25 = vld [vmem:[%s574_s2 + $0x10] sm:$0xff]   ;;  %s449_s22 = scalar_lea.vmem %s304_s21, 128  ;;  %p454_p1 = scmp.lt.s32.totalorder %s304_s21, %s304_s21 }
   0xb   :  { %382 = vmatprep.subr.bf16.mxu0 %v473_v1  ;;  %v314_v10 = vld [vmem:[%s575_s3] ss:$0 sm:$0xff]  ;;  %v356_v26 = vld [vmem:[%s574_s2 + $0x18] sm:$0xff]   ;;  %v324_v45 = vld [vmem:[%s575_s3 + $0x1] ss:$0 sm:$0xff]  ;;  %p450_p0 = scmp.ne.s32.totalorder %s304_s21, %s449_s22  ;;  %p455_p2 = scmp.lt.s32.totalorder %s449_s22, %s449_s22 }
   0xc   :  { %v334_v23 = vld [vmem:[%s574_s2] sm:$0xff]  }
   0xd   :  { %416 = vmatprep.subr.bf16.mxu1 %v334_v23  ;;  %v325_v47 = vld [vmem:[%s575_s3 + $0x2] ss:$0 sm:$0xff]  ;;  %v326_v57 = vld [vmem:[%s575_s3 + $0x3] ss:$0 sm:$0xff]  ;;  %p456_p3 = por %p455_p2, %p454_p1 }
   0xe   :  { %383 = vmatpush3.bf16.msra.mxu0 %v439_v4  ;;  %418 = vmatpush3.bf16.msra.mxu1 %v334_v23 }
   0xf   :  { %384 = vmatprep.subr.bf16.mxu0 %v473_v1  ;;  %420 = vmatprep.subr.bf16.mxu1 %v354_v24  ;;  %p457_p4 = pnand %p456_p3, %p450_p0 }
  0x12   :  { %385 = vmatpush3.bf16.msra.mxu0 %v440_v5  ;;  %422 = vmatpush3.bf16.msra.mxu1 %v354_v24 }
  0x13   :  { %386 = vmatprep.subr.bf16.mxu0 %v473_v1  ;;  %424 = vmatprep.subr.bf16.mxu1 %v355_v25 }
  0x16   :  { %387 = vmatpush3.bf16.msra.mxu0 %v441_v6  ;;  %426 = vmatpush3.bf16.msra.mxu1 %v355_v25 }
  0x17   :  { %388 = vmatprep.subr.bf16.mxu0 %v473_v1  ;;  %428 = vmatprep.subr.bf16.mxu1 %v356_v26 }
  0x1a   :  { %389 = vmatpush3.bf16.msra.mxu0 %v442_v7  ;;  %430 = vmatpush3.bf16.msra.mxu1 %v356_v26 }
  0x1b   :  { %390 = vmatprep.subr.bf16.mxu0 %v473_v1 }
  0x1e   :  { %391 = vmatpush3.bf16.msra.mxu0 %v443_v8 }
  0x21   :  { %393 = vmatmul.mubr.bf16.vlgmr.msra.gmra.mrb[0].mxu0 %v444_v9 }
  0xf4   :  { %v130_v11 = vpop.f32.mrb[0].mxu0 }
  0xf5   :  { %v131_v12 = vadd.f32 %v314_v10, %v130_v11  ;;  %v394_v13 = vpop.f32.mrb[1].mxu0 }
  0xf6   :  { %v133_v14 = vpop.f32.mrb[2].mxu0 }
  0xf7   :  { %v134_v15 = vadd.f32 %v314_v10, %v133_v14  ;;  %v395_v16 = vpop.f32.mrb[3].mxu0  ;;  %v138_v17 = vsel %vm137_vm1, %v131_v12, 0.0  ;;  %v146_v18 = vmul.f32 %v131_v12, %v131_v12 }
  0xf8   :  { %139 = vadd.xlane.f32.xlu0 %v138_v17 }
  0xf9   :  { %v148_v19 = vsel %vm137_vm1, %v146_v18, 0.0  ;;  %v147_v20 = vmul.f32 %v134_v15, %v134_v15  ;;  %v141_v21 = vsel %vm137_vm1, %v134_v15, 0.0 }
  0xfa   :  { %149 = vadd.xlane.f32.xlu1 %v148_v19 }
  0xfb   :  { %v151_v22 = vsel %vm137_vm1, %v147_v20, 0.0 }
  0xfc   :  { %142 = vadd.xlane.f32.xlu0 %v141_v21 }
  0xfe   :  { %152 = vadd.xlane.f32.xlu1 %v151_v22 }
 0x185   :  { %v140_v27 = vpop.xlane.xlu0 %139 }
 0x186   :  { %v144_v28 = vmul.f32 0.015625, %v140_v27 }
 0x187   :  { %v150_v29 = vpop.xlane.xlu1 %149 }
 0x188   :  { %v156_v30 = vmul.f32 %v144_v28, %v144_v28  ;;  %v154_v31 = vmul.f32 0.015625, %v150_v29  ;;  %v166_v43 = vsub.f32 %v131_v12, %v144_v28 }
 0x189   :  { %v143_v32 = vpop.xlane.xlu0 %142 }
 0x18a   :  { %v158_v33 = vsub.f32 %v154_v31, %v156_v30  ;;  %v145_v34 = vmul.f32 0.015625, %v143_v32 }
 0x18b   :  { %v153_v35 = vpop.xlane.xlu1 %152 }
 0x18c   :  { %v160_v36 = vmax.f32 %v158_v33, 0.0  ;;  %v157_v37 = vmul.f32 %v145_v34, %v145_v34  ;;  %v155_v38 = vmul.f32 0.015625, %v153_v35  ;;  %v167_v48 = vsub.f32 %v134_v15, %v145_v34 }
 0x18e   :  { %v162_v39 = vadd.f32 1e-05, %v160_v36  ;;  %v159_v40 = vsub.f32 %v155_v38, %v157_v37 }
 0x190   :  { %445 = vrsqrt.f32 %v162_v39  ;;  %v161_v41 = vmax.f32 %v159_v40, 0.0 }
 0x192   :  { %v163_v42 = vadd.f32 1e-05, %v161_v41 }
 0x194   :  { %447 = vrsqrt.f32 %v163_v42 }
 0x19a   :  { %v446_v44 = vpop.eup %445 }
 0x19b   :  { %v168_v46 = vmul.f32 %v446_v44, %v166_v43 }
 0x19d   :  { %v175_v49 = vmul.f32 %v324_v45, %v168_v46 }
 0x19e   :  { %v448_v50 = vpop.eup %447 }
 0x19f   :  { %v169_v51 = vmul.f32 %v448_v50, %v167_v48  ;;  %v182_v52 = vadd.f32 %v325_v47, %v175_v49 }
 0x1a1   :  { %v176_v53 = vmul.f32 %v324_v45, %v169_v51  ;;  %v184_v54 = vmax.f32 %v182_v52, 0.0 }
 0x1a3   :  { %v183_v55 = vadd.f32 %v325_v47, %v176_v53  ;;  %412 = vmatprep.mubr.msk.f32.mxu1 %vm137_vm1, %v184_v54 }
 0x1a5   :  { %v185_v56 = vmax.f32 %v183_v55, 0.0 }
 0x1a7   :  { %413 = vmatmul.mubr.msk.f32.vlgmr.msra.gmra.mrb[0].mxu1 %vm137_vm1, %v185_v56 }
 0x27a   :  { %v414_v58 = vpop.f32.mrb[0].mxu1 }
 0x27b   :  { %v285_v59 = vadd.f32 %v414_v58, %v326_v57  ;;  %v279_v60 = vpop.f32.mrb[1].mxu1 }
 0x27c   :  { %v280_v61 = vadd.f32 %v326_v57, %v279_v60 }
 0x27e   :  { %v352_v62 = vpack.c.bf16 %v285_v59, %v280_v61 }
 0x280   :  { %353 = vst [vmem:[#allocation2] sm:$0xff] %v352_v62  }
 0x281   :  { %460 = shalt.err (!%p457_p4)
}
 0x282   :  { %s461_s3 = scalar_lea.hbm %s576_s4, 128 }
 0x283   :  { %p462_p5 = scmp.ne.s32.totalorder %s576_s4, %s461_s3  ;;  %p465_p6 = scmp.lt.u32.totalorder %s461_s3, %s576_s4 }
 0x285   :  { %p467_p7 = pnand %p465_p6, %p462_p5 }
 0x287   :  { %470 = shalt.err (!%p467_p7)
}
 0x288   :  { %s476_s29 = smov 64   ;;  %s477_s30 = smov 4  }
 0x289   :  { %309 = dma.vmem_to_hbm [thread:$0]  %s304_s21, 128, %s576_s4, [#allocation3], %s476_s29, %s476_s29, %s477_s30  }
 0x28a   :  { %471 = dma.done.wait [#allocation3], 128  }
 0x28b   :  { %472 = vsyncadd [#allocation3], 4294967168 }
 0x28c   :  { %313 = vsyncpa [#allocation3], 1 }

</bundles_post_ra>
